<compile_context>
chip_gen: v6e
topology: v6e:2x2x1
jax: 0.10.0
libtpu: 0.0.40
codegen_flags: <defaults>
</compile_context>

<pallas_src>
import jax
import jax.numpy as jnp
from jax.experimental import pallas as pl
from jax.experimental.pallas import tpu as pltpu


def _device_kind() -> str:
    try:
        return jax.devices()[0].device_kind.lower()
    except Exception:
        return ""


def _vmem_cap_bytes(kind: str) -> int:
    # v4/v5e/v6e have 128 MiB physical VMEM -> allow up to ~96 MiB.
    # v7x has 64 MiB physical VMEM -> stay under ~48 MiB (safe default too).
    if ("v4" in kind) or ("v5" in kind) or ("v6" in kind):
        return 96 * 1024 * 1024
    return 48 * 1024 * 1024


def _bf16_vpu_capable(kind: str) -> bool:
    # v6e / v7x have bf16 VPU & EUP; v5e and older do not.
    return not any(v in kind for v in ("v2", "v3", "v4", "v5"))


def _make_se_kernel(Bt, C, I, HW, use_mxu, mul_dtype):
    inv_hw = 1.0 / float(HW)

    def kernel(x_ref, wd_ref, bd_ref, wu_ref, bu_ref, o_ref):
        # ---- squeeze: spatial mean with f32 accumulation (no f32 slab kept).
        pooled = jnp.sum(x_ref[...].astype(jnp.float32), axis=-1) * inv_hw  # (Bt, C)

        # ---- excitation: down-proj + ReLU, up-proj (+ sigmoid below).
        if use_mxu:
            d = jnp.dot(pooled, wd_ref[...],
                        preferred_element_type=jnp.float32) + bd_ref[...]   # (Bt, I)
            d = jnp.maximum(d, 0.0)
            u = jnp.dot(d, wu_ref[...],
                        preferred_element_type=jnp.float32) + bu_ref[...]   # (Bt, C)
        else:
            # Tiny C / I: VPU broadcast-multiply-add (statically unrolled),
            # keeping MXU push+drain latency off the per-step critical path.
            d = jnp.zeros((Bt, I), jnp.float32)
            for c in range(C):
                d = d + pooled[:, c:c + 1] * wd_ref[c, :]        # (Bt,1)*(I,)
            d = jnp.maximum(d + bd_ref[...], 0.0)                # (Bt, I)
            u = jnp.zeros((Bt, C), jnp.float32)
            for i in range(I):
                u = u + d[:, i:i + 1] * wu_ref[i, :]             # (Bt,1)*(C,)
            u = u + bu_ref[...]                                   # (Bt, C)

        scale = jax.nn.sigmoid(u).astype(mul_dtype)               # (Bt, C)

        # ---- scale: re-read the tile (no long-lived f32 copy), rescale
        #      per-vreg in mul_dtype, cast only at the final store.
        x = x_ref[...]
        o_ref[...] = (x.astype(mul_dtype) * scale[:, :, None]).astype(o_ref.dtype)

    return kernel


def se_block(x_nchw, w_down, b_down, w_up, b_up):
    """SEBlock forward.

    x_nchw: (B, C, H, W); w_down: (I, C); b_down: (I,); w_up: (C, I); b_up: (C,).
    Returns (B, C, H, W) in the input dtype.
    """
    B, C, H, W = x_nchw.shape
    I = w_down.shape[0]
    HW = H * W
    dtype = x_nchw.dtype

    kind = _device_kind()
    vmem_cap = _vmem_cap_bytes(kind)

    # Flatten spatial dims; keep the native dtype (no wrapper-side astype).
    x = x_nchw.reshape(B, C, HW)

    # Weights oriented for lane-dense (Bt,C)@(C,I) / (Bt,I)@(I,C); biases as
    # lane-dense rows.  The same orientation serves the MXU and VPU FC paths.
    wd = jnp.transpose(w_down).astype(jnp.float32)       # (C, I)
    wu = jnp.transpose(w_up).astype(jnp.float32)         # (I, C)
    bd = b_down.reshape(1, I).astype(jnp.float32)
    bu = b_up.reshape(1, C).astype(jnp.float32)

    # FC path selection: the systolic array only pays off for large C.
    use_mxu = C >= 128

    # Final-rescale dtype: native (bf16) on bf16-capable VPUs; f32 per-vreg on
    # v5e-class parts; f32 inputs multiply natively in f32 either way.
    if jnp.dtype(dtype).itemsize >= 4 or _bf16_vpu_capable(kind):
        mul_dtype = dtype
    else:
        mul_dtype = jnp.float32

    # ---- Bt selection: big tiles (amortize the ~0.35us/step overhead), but
    # keep >= 2 grid steps (and an even count when possible) so both v7x
    # TensorCores get balanced work via the "parallel" batch axis.
    elt = jnp.dtype(dtype).itemsize
    per_b_bytes = C * HW * elt
    target_tile_bytes = (8 * 1024 * 1024 if vmem_cap <= 48 * 1024 * 1024
                         else 16 * 1024 * 1024)
    divisors = [d for d in range(1, B + 1) if B % d == 0]
    fitting = [d for d in divisors if d * per_b_bytes <= target_tile_bytes] or [1]
    multi_step = [d for d in fitting if B // d >= 2] or fitting
    even_step = [d for d in multi_step if (B // d) % 2 == 0] or multi_step
    Bt = max(even_step)
    grid = (B // Bt,)
    # NOTE: if a single batch element's (C, HW) slab ever exceeded the VMEM
    # budget, a two-phase pool-then-scale kernel tiled over HW would be
    # required; SE-typical shapes never hit that.

    # ---- VMEM budget: double-buffered in + out tiles (no f32-slab term) plus
    # weights/headroom, clamped per generation.
    tile_bytes = Bt * C * HW * elt
    vmem_bytes = 2 * (tile_bytes + tile_bytes) + (2 << 20)
    vmem_bytes = int(min(max(vmem_bytes, 32 * 1024 * 1024), vmem_cap))

    kernel = _make_se_kernel(Bt, C, I, HW, use_mxu, mul_dtype)

    out = pl.pallas_call(
        kernel,
        out_shape=jax.ShapeDtypeStruct((B, C, HW), dtype),
        grid_spec=pltpu.PrefetchScalarGridSpec(
            num_scalar_prefetch=0,
            grid=grid,
            in_specs=[
                pl.BlockSpec((Bt, C, HW), lambda b: (b, 0, 0)),   # input slab
                pl.BlockSpec((C, I), lambda b: (0, 0)),           # down weight
                pl.BlockSpec((1, I), lambda b: (0, 0)),           # down bias
                pl.BlockSpec((I, C), lambda b: (0, 0)),           # up weight
                pl.BlockSpec((1, C), lambda b: (0, 0)),           # up bias
            ],
            out_specs=pl.BlockSpec((Bt, C, HW), lambda b: (b, 0, 0)),
        ),
        compiler_params=pltpu.CompilerParams(
            dimension_semantics=("parallel",),
            vmem_limit_bytes=vmem_bytes,
        ),
    )(x, wd, bd, wu, bu)

    return out.reshape(B, C, H, W)


def se_block_ref(x, w_down, b_down, w_up, b_up):
    """Pure-JAX reference matching the PyTorch forward."""
    pooled = jnp.mean(x.astype(jnp.float32), axis=(2, 3))              # (B, C)
    d = jnp.maximum(pooled @ w_down.T.astype(jnp.float32) + b_down, 0.0)
    u = jax.nn.sigmoid(d @ w_up.T.astype(jnp.float32) + b_up)          # (B, C)
    return (x.astype(jnp.float32) * u[:, :, None, None]).astype(x.dtype)


if __name__ == "__main__":
    # Module config: input_channels=4, internal_neurons=2
    B, C, H, W = 2, 4, 16, 16
    I = 2

    key = jax.random.PRNGKey(0)
    kx, kwd, kbd, kwu, kbu = jax.random.split(key, 5)

    x = jax.random.normal(kx, (B, C, H, W), dtype=jnp.float32)
    # 1x1 conv weights are (out, in, 1, 1) in PyTorch; squeeze to (out, in).
    w_down = jax.random.normal(kwd, (I, C), dtype=jnp.float32) * 0.1
    b_down = jax.random.normal(kbd, (I,), dtype=jnp.float32) * 0.1
    w_up = jax.random.normal(kwu, (C, I), dtype=jnp.float32) * 0.1
    b_up = jax.random.normal(kbu, (C,), dtype=jnp.float32) * 0.1

    out = jax.block_until_ready(se_block(x, w_down, b_down, w_up, b_up))

    ref = se_block_ref(x, w_down, b_down, w_up, b_up)
    assert out.shape == (B, C, H, W)
    assert out.dtype == x.dtype
    assert jnp.allclose(out, ref, atol=1e-5, rtol=1e-5)

    print("KERNEL_OK")
</pallas_src>

<mosaic_0001>
module attributes {stable_mosaic.version = 11 : i64} {
  func.func @kernel(%arg0: i32, %arg1: memref<1x4x256xf32, #tpu.memory_space<vmem>>, %arg2: memref<4x2xf32, #tpu.memory_space<vmem>>, %arg3: memref<1x2xf32, #tpu.memory_space<vmem>>, %arg4: memref<2x4xf32, #tpu.memory_space<vmem>>, %arg5: memref<1x4xf32, #tpu.memory_space<vmem>>, %arg6: memref<1x4x256xf32, #tpu.memory_space<vmem>>) attributes {dimension_semantics = [#tpu.dimension_semantics<parallel>], iteration_bounds = array<i64: 2>, scalar_prefetch = 0 : i64, scratch_operands = 0 : i64, tpu.core_type = #tpu.core_type<tc>, window_params = [{transform_indices = @transform_0, window_bounds = array<i64: 1, 4, 256>}, {pipeline_mode = #tpu.pipeline_mode<synchronous>, transform_indices = @transform_1, window_bounds = array<i64: 4, 2>}, {pipeline_mode = #tpu.pipeline_mode<synchronous>, transform_indices = @transform_2, window_bounds = array<i64: 1, 2>}, {pipeline_mode = #tpu.pipeline_mode<synchronous>, transform_indices = @transform_3, window_bounds = array<i64: 2, 4>}, {pipeline_mode = #tpu.pipeline_mode<synchronous>, transform_indices = @transform_4, window_bounds = array<i64: 1, 4>}, {transform_indices = @transform_5, window_bounds = array<i64: 1, 4, 256>}]} {
    %c0 = arith.constant 0 : index
    %c0_0 = arith.constant 0 : index
    %c0_1 = arith.constant 0 : index
    %0 = vector.load %arg1[%c0, %c0_0, %c0_1] : memref<1x4x256xf32, #tpu.memory_space<vmem>>, vector<1x4x256xf32>
    %cst = arith.constant dense<0.000000e+00> : vector<1x4xf32>
    %1 = vector.multi_reduction <add>, %0, %cst [2] : vector<1x4x256xf32> to vector<1x4xf32>
    %cst_2 = arith.constant 3.906250e-03 : f32
    %2 = vector.broadcast %cst_2 : f32 to vector<1x4xf32>
    %3 = arith.mulf %1, %2 : vector<1x4xf32>
    %cst_3 = arith.constant 0.000000e+00 : f32
    %4 = vector.broadcast %cst_3 : f32 to vector<1x2xf32>
    %5 = vector.extract_strided_slice %3 {offsets = [0, 0], sizes = [1, 1], strides = [1, 1]} : vector<1x4xf32> to vector<1x1xf32>
    %c0_4 = arith.constant 0 : index
    %c0_5 = arith.constant 0 : index
    %6 = vector.load %arg2[%c0_4, %c0_5] : memref<4x2xf32, #tpu.memory_space<vmem>>, vector<1x2xf32>
    %7 = vector.shape_cast %6 : vector<1x2xf32> to vector<2xf32>
    %8 = vector.shape_cast %7 : vector<2xf32> to vector<1x2xf32>
    %9 = vector.broadcast %5 : vector<1x1xf32> to vector<1x2xf32>
    %10 = arith.mulf %9, %8 : vector<1x2xf32>
    %11 = arith.addf %4, %10 : vector<1x2xf32>
    %12 = vector.extract_strided_slice %3 {offsets = [0, 1], sizes = [1, 1], strides = [1, 1]} : vector<1x4xf32> to vector<1x1xf32>
    %c1 = arith.constant 1 : index
    %c0_6 = arith.constant 0 : index
    %13 = vector.load %arg2[%c1, %c0_6] : memref<4x2xf32, #tpu.memory_space<vmem>>, vector<1x2xf32>
    %14 = vector.shape_cast %13 : vector<1x2xf32> to vector<2xf32>
    %15 = vector.shape_cast %14 : vector<2xf32> to vector<1x2xf32>
    %16 = vector.broadcast %12 : vector<1x1xf32> to vector<1x2xf32>
    %17 = arith.mulf %16, %15 : vector<1x2xf32>
    %18 = arith.addf %11, %17 : vector<1x2xf32>
    %19 = vector.extract_strided_slice %3 {offsets = [0, 2], sizes = [1, 1], strides = [1, 1]} : vector<1x4xf32> to vector<1x1xf32>
    %c2 = arith.constant 2 : index
    %c0_7 = arith.constant 0 : index
    %20 = vector.load %arg2[%c2, %c0_7] : memref<4x2xf32, #tpu.memory_space<vmem>>, vector<1x2xf32>
    %21 = vector.shape_cast %20 : vector<1x2xf32> to vector<2xf32>
    %22 = vector.shape_cast %21 : vector<2xf32> to vector<1x2xf32>
    %23 = vector.broadcast %19 : vector<1x1xf32> to vector<1x2xf32>
    %24 = arith.mulf %23, %22 : vector<1x2xf32>
    %25 = arith.addf %18, %24 : vector<1x2xf32>
    %26 = vector.extract_strided_slice %3 {offsets = [0, 3], sizes = [1, 1], strides = [1, 1]} : vector<1x4xf32> to vector<1x1xf32>
    %c3 = arith.constant 3 : index
    %c0_8 = arith.constant 0 : index
    %27 = vector.load %arg2[%c3, %c0_8] : memref<4x2xf32, #tpu.memory_space<vmem>>, vector<1x2xf32>
    %28 = vector.shape_cast %27 : vector<1x2xf32> to vector<2xf32>
    %29 = vector.shape_cast %28 : vector<2xf32> to vector<1x2xf32>
    %30 = vector.broadcast %26 : vector<1x1xf32> to vector<1x2xf32>
    %31 = arith.mulf %30, %29 : vector<1x2xf32>
    %32 = arith.addf %25, %31 : vector<1x2xf32>
    %c0_9 = arith.constant 0 : index
    %c0_10 = arith.constant 0 : index
    %33 = vector.load %arg3[%c0_9, %c0_10] : memref<1x2xf32, #tpu.memory_space<vmem>>, vector<1x2xf32>
    %34 = arith.addf %32, %33 : vector<1x2xf32>
    %cst_11 = arith.constant 0.000000e+00 : f32
    %35 = vector.broadcast %cst_11 : f32 to vector<1x2xf32>
    %36 = arith.maximumf %34, %35 : vector<1x2xf32>
    %cst_12 = arith.constant 0.000000e+00 : f32
    %37 = vector.broadcast %cst_12 : f32 to vector<1x4xf32>
    %38 = vector.extract_strided_slice %36 {offsets = [0, 0], sizes = [1, 1], strides = [1, 1]} : vector<1x2xf32> to vector<1x1xf32>
    %c0_13 = arith.constant 0 : index
    %c0_14 = arith.constant 0 : index
    %39 = vector.load %arg4[%c0_13, %c0_14] : memref<2x4xf32, #tpu.memory_space<vmem>>, vector<1x4xf32>
    %40 = vector.shape_cast %39 : vector<1x4xf32> to vector<4xf32>
    %41 = vector.shape_cast %40 : vector<4xf32> to vector<1x4xf32>
    %42 = vector.broadcast %38 : vector<1x1xf32> to vector<1x4xf32>
    %43 = arith.mulf %42, %41 : vector<1x4xf32>
    %44 = arith.addf %37, %43 : vector<1x4xf32>
    %45 = vector.extract_strided_slice %36 {offsets = [0, 1], sizes = [1, 1], strides = [1, 1]} : vector<1x2xf32> to vector<1x1xf32>
    %c1_15 = arith.constant 1 : index
    %c0_16 = arith.constant 0 : index
    %46 = vector.load %arg4[%c1_15, %c0_16] : memref<2x4xf32, #tpu.memory_space<vmem>>, vector<1x4xf32>
    %47 = vector.shape_cast %46 : vector<1x4xf32> to vector<4xf32>
    %48 = vector.shape_cast %47 : vector<4xf32> to vector<1x4xf32>
    %49 = vector.broadcast %45 : vector<1x1xf32> to vector<1x4xf32>
    %50 = arith.mulf %49, %48 : vector<1x4xf32>
    %51 = arith.addf %44, %50 : vector<1x4xf32>
    %c0_17 = arith.constant 0 : index
    %c0_18 = arith.constant 0 : index
    %52 = vector.load %arg5[%c0_17, %c0_18] : memref<1x4xf32, #tpu.memory_space<vmem>>, vector<1x4xf32>
    %53 = arith.addf %51, %52 : vector<1x4xf32>
    %54 = arith.negf %53 : vector<1x4xf32>
    %55 = math.exp %54 : vector<1x4xf32>
    %cst_19 = arith.constant 1.000000e+00 : f32
    %56 = vector.broadcast %cst_19 : f32 to vector<1x4xf32>
    %57 = arith.addf %56, %55 : vector<1x4xf32>
    %58 = arith.divf %56, %57 : vector<1x4xf32>
    %c0_20 = arith.constant 0 : index
    %c0_21 = arith.constant 0 : index
    %c0_22 = arith.constant 0 : index
    %59 = vector.load %arg1[%c0_20, %c0_21, %c0_22] : memref<1x4x256xf32, #tpu.memory_space<vmem>>, vector<1x4x256xf32>
    %60 = vector.shape_cast %58 : vector<1x4xf32> to vector<1x4x1xf32>
    %61 = vector.broadcast %60 : vector<1x4x1xf32> to vector<1x4x256xf32>
    %62 = arith.mulf %59, %61 : vector<1x4x256xf32>
    %c0_23 = arith.constant 0 : index
    %c0_24 = arith.constant 0 : index
    %c0_25 = arith.constant 0 : index
    %63 = vector.load %arg6[%c0_23, %c0_24, %c0_25] : memref<1x4x256xf32, #tpu.memory_space<vmem>>, vector<1x4x256xf32>
    tpu.vector_store %arg6[%c0_23, %c0_24, %c0_25], %62 {strides = array<i32>} : memref<1x4x256xf32, #tpu.memory_space<vmem>>, vector<1x4x256xf32>,
    return
  }
  func.func @transform_0(%arg0: i32) -> (i32, i32, i32) {
    %c0_i32 = arith.constant 0 : i32
    %c0_i32_0 = arith.constant 0 : i32
    %c0_i32_1 = arith.constant 0 : i32
    return %arg0, %c0_i32, %c0_i32_0 : i32, i32, i32
  }
  func.func @transform_1(%arg0: i32) -> (i32, i32) {
    %c0_i32 = arith.constant 0 : i32
    %c0_i32_0 = arith.constant 0 : i32
    %c0_i32_1 = arith.constant 0 : i32
    return %c0_i32, %c0_i32_0 : i32, i32
  }
  func.func @transform_2(%arg0: i32) -> (i32, i32) {
    %c0_i32 = arith.constant 0 : i32
    %c0_i32_0 = arith.constant 0 : i32
    %c0_i32_1 = arith.constant 0 : i32
    return %c0_i32, %c0_i32_0 : i32, i32
  }
  func.func @transform_3(%arg0: i32) -> (i32, i32) {
    %c0_i32 = arith.constant 0 : i32
    %c0_i32_0 = arith.constant 0 : i32
    %c0_i32_1 = arith.constant 0 : i32
    return %c0_i32, %c0_i32_0 : i32, i32
  }
  func.func @transform_4(%arg0: i32) -> (i32, i32) {
    %c0_i32 = arith.constant 0 : i32
    %c0_i32_0 = arith.constant 0 : i32
    %c0_i32_1 = arith.constant 0 : i32
    return %c0_i32, %c0_i32_0 : i32, i32
  }
  func.func @transform_5(%arg0: i32) -> (i32, i32, i32) {
    %c0_i32 = arith.constant 0 : i32
    %c0_i32_0 = arith.constant 0 : i32
    %c0_i32_1 = arith.constant 0 : i32
    return %arg0, %c0_i32, %c0_i32_0 : i32, i32, i32
  }
}

</mosaic_0001>

<bundles_post_ra>
// kernel: tpu_custom_call.1
= control target key start
LH: loop header
LB: loop body
LE: loop exit
PB: predicated region body
PF: predicated region fallthrough
CT: control target
= control target key end

     0   :  { %10 = vsyncpa [#allocation3], 0  ;;  %s789_s0 = inlined_call_operand.hbm [shape: f32[2,4,256], index: 0, kind: input, shape index: {}]   ;;  %s790_s1 = inlined_call_operand.vmem [shape: f32[4,2], index: 1, kind: input, shape index: {}]   ;;  %s791_s2 = inlined_call_operand.vmem [shape: f32[1,2], index: 2, kind: input, shape index: {}]   ;;  %s792_s3 = inlined_call_operand.vmem [shape: f32[2,4], index: 3, kind: input, shape index: {}]   ;;  %s793_s4 = inlined_call_operand.vmem [shape: f32[1,4], index: 4, kind: input, shape index: {}]   ;;  %s794_s5 = inlined_call_operand.hbm [shape: f32[2,4,256], index: 5, kind: output, shape index: {}]  }
   0x1   :  { %12 = vsyncpa [#allocation3 + $0x1], 0 }
   0x2   :  { %13 = vsyncpa [#allocation4], 0 }
   0x3   :  { %15 = vsyncpa [#allocation4 + $0x1], 0  ;;  %s614_s18 = smov 0   ;;  %s616_s19 = smov 0  }
   0x4   :  { %s618_s20 = smov 0   ;;  %s620_s21 = smov 0  }
   0x5 LB: > { %s635_s22 = sadd.s32 4294967295, %s577_s21   ;;  %s411_s23 = sadd.s32 4294967294, %s577_s21   ;;  %s577_s21 = sphi %s620_s21, %s811_s21   ;;  %s573_s20 = sphi %s618_s20, %s810_s20   ;;  %s569_s19 = sphi %s616_s19, %s809_s19   ;;  %s565_s18 = sphi %s614_s18, %s808_s18  }
   0x6   : > { %s639_s24 = sadd.s32 1, %s577_s21   ;;  %s28_s25 = sadd.s32 1, %s573_s20 }
   0x7   : > { %s25_s26 = ssub.s32 %s577_s21, %s639_s24  ;;  %p35_p0 = scmp.ne.s32.totalorder %s573_s20, %s569_s19 }
   0x8   : > { %p26_p1 = scmp.eq.s32.totalorder %s25_s26, 0  ;;  %p36_p2 = scmp.eq.s32.totalorder %s577_s21, 0 }
   0x9   : > { %p41_p3 = scmp.ne.s32.totalorder %s569_s19, %s565_s18  ;;  %p42_p4 = scmp.eq.s32.totalorder %s635_s22, 0 }
   0xa   : > { %s651_s27 = scalar_select %p26_p1, %s573_s20, %s28_s25  }
   0xb   : > { %p653_p5 = por %p36_p2, %p35_p0  ;;  %p657_p6 = por %p42_p4, %p41_p3 }
   0xc   : > { %p149_p7 = scmp.eq.s32.totalorder %s635_s22, 1  ;;  %p155_p8 = scmp.eq.s32.totalorder %s411_s23, 1 }
   0xd   : > { %s798_s29 = scalar_select %p657_p6, 1, 0 }
   0xe   : > { %p440_p10 = scmp.lt.s32.totalorder %s577_s21, 2  ;;  %p664_p11 = por %p149_p7, %p35_p0 }
   0xf   : > { %p668_p12 = por %p155_p8, %p41_p3  ;;  %s187_s7 = sand.u32 1, %s573_s20  }
  0x10   : > { %s799_s30 = scalar_select %p664_p11, 1, 0 }
  0x11   : > { %s800_s6 = scalar_select %p668_p12, 1, 0 }
  0x12   : > { %s426_s8 = sshll.u32 %s577_s21, 7  ;;  %s414_s9 = sshll.u32 %s187_s7, 3 }
  0x13   : > { %s677_s12 = scalar_lea.hbm %s789_s0, %s426_s8  ;;  %s191_s13 = scalar_lea.vmem [#allocation2], %s414_s9 }
  0x14   : > { %s199_s14 = sshll.u32 %s191_s13, 4  ;;  %p681_p13 = pnand %p440_p10, %p653_p5  ;;  %s685_s14 = int_to_ptr.vmem [resolvable:$true] %s199_s14 }
  0x15   : > { %s188_s16 = scalar_lea.sflag [#allocation3], %s187_s7  ;;  %s485_s17 = scalar_lea.hbm %s677_s12, 128 }
  0x16   : > { %p486_p2 = scmp.ne.s32.totalorder %s677_s12, %s485_s17  ;;  %p487_p3 = pneg %p681_p13 }
  0x17   : > { %s490_s26 = scalar_lea.hbm %s789_s0, 256  ;;  %p491_p5 = scmp.lt.s32.totalorder %s677_s12, %s789_s0 }
  0x18   : > { %p488_p4 = pnand %p487_p3, %p486_p2  ;;  %p492_p8 = scmp.lt.s32.totalorder %s490_s26, %s485_s17 }
  0x1a   : > { %p489_p7 = pneg %p488_p4  ;;  %p493_p10 = por %p492_p8, %p491_p5 }
  0x1c   : > { %p494_p9 = pnand %p493_p10, %p489_p7 }
  0x1e   : > { %497 = shalt.err (!%p494_p9)
}
  0x1f   : > { %s498_s7 = scalar_lea.vmem %s685_s14, 128  ;;  %s579_s9 = smov [#allocation2]  }
  0x20   : > { %p499_p0 = scmp.ne.s32.totalorder %s685_s14, %s498_s7  ;;  %s503_s10 = sshll.u32 %s579_s9, 4  ;;  %s504_s10 = int_to_ptr.vmem [resolvable:$false] %s503_s10 }
  0x21   : > { %s505_s11 = scalar_lea.vmem %s504_s10, 256  ;;  %p506_p4 = scmp.lt.s32.totalorder %s685_s14, %s504_s10 }
  0x22   : > { %p501_p1 = pnand %p499_p0, %p487_p3  ;;  %p507_p12 = scmp.lt.s32.totalorder %s505_s11, %s498_s7 }
  0x24   : > { %p502_p2 = pneg %p501_p1  ;;  %p508_p11 = por %p507_p12, %p506_p4 }
  0x26   : > { %p509_p6 = pnand %p508_p11, %p502_p2 }
  0x28   : > { %512 = shalt.err (!%p509_p6)
}
  0x29   : > { %435 = dma.hbm_to_vmem [thread:$0]  (!%p681_p13), %s677_s12, 128, %s685_s14, %s188_s16  }
  0x2a   : > { %p802_p9 = scmp.lt.s32.totalorder %s577_s21, 3  ;;  %p803_p7 = scmp.ge.s32.totalorder %s577_s21, 1 }
  0x2c   : > { %p205_p0 = pnand %p803_p7, %p802_p9 }
  0x2d   : > { %s712_s13 = sand.u32 (!%p205_p0), 1, %s569_s19   ;;  %p804_p6 = scmp.ne.s32.totalorder (!%p205_p0), %s798_s29, 0 }
  0x2e   : > { %208 = sbr.rel (%p205_p0) target bundleno = 508 (0x1fc), region = 40  ;;  %s418_s17 = sshll.u32 (!%p205_p0), %s712_s13, 3 }
  0x2f   : > { %s211_s23 = scalar_lea.sflag (!%p205_p0), [#allocation3], %s712_s13  ;;  %s214_s15 = scalar_lea.vmem (!%p205_p0), [#allocation2], %s418_s17 }
  0x33   : > { %556 = dma.done.wait (%p804_p6), %s211_s23, 128  }
  0x34   : > { %558 = vsyncadd (%p804_p6), %s211_s23, 4294967168  ;;  %vm245_vm0 = vcmask 1043456   ;;  %v722_v0 = vld [vmem:[%s214_s15] sm:$0xff]  ;;  %v580_v5 = vmov 1   ;;  %v581_v6 = vmov 0   ;;  %v308_v41 = vlaneseq  ;;  %s427_s29 = sshll.u32 %s635_s22, 7 }
  0x35   : > { %v243_v1 = vcombine.high %v722_v0, %v722_v0  ;;  %v246_v2 = vsel %vm245_vm0, %v722_v0, 0.0  ;;  %478 = vset.pattern.permute.xlu1 %v580_v5  ;;  %477 = vset.pattern.permute.xlu0 %v581_v6  ;;  %v255_v7 = vld [vmem:[%s790_s1 + $0x1] sm:$0x1]  ;;  %v264_v8 = vld [vmem:[%s790_s1 + $0x2] sm:$0x1]  ;;  %s240_s16 = scalar_lea.vmem [#allocation5], %s418_s17  ;;  %s339_s8 = scalar_lea.hbm %s794_s5, %s427_s29 }
  0x36   : > { %v273_v9 = vld [vmem:[%s790_s1 + $0x3] sm:$0x1]  ;;  %v257_v10 = vrot.slane %v255_v7, 7  ;;  %v266_v11 = vrot.slane %v264_v8, 6  ;;  %v252_v15 = vld [vmem:[%s790_s1] sm:$0x1] }
  0x37   : > { %v247_v3 = vsel %vm245_vm0, %v243_v1, 0.0  ;;  %v275_v14 = vrot.slane %v273_v9, 5  ;;  %v282_v25 = vld [vmem:[%s791_s2] sm:$0x1]  ;;  %v293_v29 = vld [vmem:[%s792_s3 + $0x1] sm:$0x1] }
  0x38   : > { %v248_v4 = vadd.f32 %v247_v3, %v246_v2  ;;  %v285_v30 = vld [vmem:[%s792_s3] sm:$0x1]  ;;  %v309_v42 = vshrl.u32 %v308_v41, 7  ;;  %v582_v46 = vmov 839922192   ;;  %s341_s25 = sshll.u32 %s240_s16, 4  ;;  %s342_s25 = int_to_ptr.vmem [resolvable:$true] %s341_s25 }
  0x39   : > { %v300_v35 = vld [vmem:[%s793_s4] sm:$0x1]  ;;  %v317_v47 = vunpack.c.l.s4 %v582_v46  ;;  %s327_s7 = scalar_lea.sflag [#allocation4], %s712_s13  ;;  %s513_s9 = scalar_lea.vmem %s342_s25, 128 }
  0x3a   : > { %249 = vadd.xlane.f32.xlu0 %v248_v4  ;;  %v310_v43 = vsub.s32 0, %v309_v42  ;;  %p514_p11 = scmp.ne.s32.totalorder %s342_s25, %s513_s9  ;;  %p805_p12 = scmp.ne.s32.totalorder %s799_s30, 0 }
  0x3b   : > { %v318_v48 = vunpack.c.0.s8 %v317_v47  ;;  %s583_s10 = smov [#allocation5]  }
  0x3c   : > { %p515_p13 = pnand %p514_p11, %p805_p12  ;;  %s517_s22 = sshll.u32 %s583_s10, 4  ;;  %s518_s22 = int_to_ptr.vmem [resolvable:$false] %s517_s22 }
  0x3d   : > { %v321_v49 = vsub.s32 %v318_v48, %v309_v42  ;;  %s519_s17 = scalar_lea.vmem %s518_s22, 256  ;;  %p520_p3 = scmp.lt.s32.totalorder %s342_s25, %s518_s22 }
  0x3e   : > { %p516_p1 = pneg %p515_p13  ;;  %p521_p5 = scmp.lt.s32.totalorder %s519_s17, %s513_s9 }
  0x40   : > { %p522_p8 = por %p521_p5, %p520_p3 }
  0x42   : > { %p523_p10 = pnand %p522_p8, %p516_p1 }
  0xc3   : > { %v250_v12 = vpop.xlane.xlu0 %249 }
  0xc4   : > { %v251_v13 = vmul.f32 0.00390625, %v250_v12 }
  0xc6   : > { %v259_v16 = vmul.f32 %v257_v10, %v251_v13  ;;  %v268_v17 = vmul.f32 %v266_v11, %v251_v13  ;;  %v253_v18 = vmul.f32 %v252_v15, %v251_v13  ;;  %v277_v20 = vmul.f32 %v275_v14, %v251_v13 }
  0xc8   : > { %v261_v19 = vrot.slane %v259_v16, 1  ;;  %v270_v22 = vrot.slane %v268_v17, 2  ;;  %v279_v24 = vrot.slane %v277_v20, 3 }
  0xca   : > { %v263_v21 = vadd.f32 %v261_v19, %v253_v18 }
  0xcc   : > { %v272_v23 = vadd.f32 %v270_v22, %v263_v21 }
  0xce   : > { %v281_v26 = vadd.f32 %v279_v24, %v272_v23 }
  0xd0   : > { %v283_v27 = vadd.f32 %v282_v25, %v281_v26 }
  0xd2   : > { %v284_v28 = vmax.f32 %v283_v27, 0.0 }
  0xd4   : > { %295 = vperm.xlu1 %478, %v284_v28   ;;  %288 = vperm.xlu0 %477, %v284_v28  }
  0xd8   : > { %479 = vset.pattern.permute.xlu0 %v580_v5 }
 0x14f   : > { %v296_v31 = vpop.permute.xlu1 %295  ;;  %v289_v32 = vpop.permute.xlu0 %288 }
 0x150   : > { %v298_v33 = vmul.f32 %v296_v31, %v293_v29  ;;  %v291_v34 = vmul.f32 %v289_v32, %v285_v30 }
 0x152   : > { %v299_v36 = vadd.f32 %v298_v33, %v291_v34 }
 0x154   : > { %v301_v37 = vadd.f32 %v300_v35, %v299_v36 }
 0x156   : > { %v420_v38 = vmul.f32 -1.442695, %v301_v37 }
 0x158   : > { %481 = vpow2.f32 %v420_v38 }
 0x165   : > { %v482_v39 = vpop.eup %481 }
 0x166   : > { %v305_v40 = vadd.f32 1.0, %v482_v39 }
 0x168   : > { %483 = vrcp.f32 %v305_v40 }
 0x175   : > { %v484_v44 = vpop.eup %483 }
 0x176   : > { %v311_v45 = vrot.slane %v484_v44, %v310_v43 }
 0x178   : > { %313 = vbcast.lane.b32.xlu1 %v311_v45, 256 }
 0x1ea   : > { %v314_v50 = vpop.permute.xlu1 %313 }
 0x1eb   : > { %v322_v51 = vrot.slane %v314_v50, %v321_v49 }
 0x1ed   : > { %v324_v52 = vmul.f32 %v322_v51, %v722_v0 }
 0x1ef   : > { %325 = vst [vmem:[%s240_s16] sm:$0xff] %v324_v52 }
 0x1f0   : > { %526 = shalt.err (!%p523_p10)
}
 0x1f1   : > { %s527_s11 = scalar_lea.hbm %s339_s8, 128  ;;  %s531_s15 = scalar_lea.hbm %s794_s5, 256 }
 0x1f2   : > { %p528_p2 = scmp.ne.s32.totalorder %s339_s8, %s527_s11  ;;  %p532_p7 = scmp.lt.s32.totalorder %s339_s8, %s794_s5 }
 0x1f3   : > { %p533_p0 = scmp.lt.s32.totalorder %s531_s15, %s527_s11 }
 0x1f4   : > { %p529_p4 = pnand %p528_p2, %p805_p12 }
 0x1f5   : > { %p534_p6 = por %p533_p0, %p532_p7 }
 0x1f6   : > { %p530_p9 = pneg %p529_p4 }
 0x1f8   : > { %p535_p11 = pnand %p534_p6, %p530_p9 }
 0x1fa   : > { %538 = shalt.err (!%p535_p11)
}
 0x1fb   : > { %430 = dma.vmem_to_hbm [thread:$0]  (%p805_p12), %s342_s25, 128, %s339_s8, %s327_s7  }
 0x1fc PF: > { %s353_s29 = sand.u32 1, %s565_s18   ;;  %p806_p13 = scmp.ne.s32.totalorder %s800_s6, 0 }
 0x1fd   : > { %p807_p1 = scmp.ge.s32.totalorder %s577_s21, 2  ;;  %s354_s16 = scalar_lea.sflag [#allocation4], %s353_s29 }
 0x1ff   : > { %p437_p3 = pnand %p807_p1, %p806_p13 }
 0x201   : > { %p438_p5 = pneg %p437_p3 }
 0x203   : > { %560 = dma.done.wait (%p438_p5), %s354_s16, 128  }
 0x204   : > { %562 = vsyncadd (%p438_p5), %s354_s16, 4294967168  ;;  %p18_p8 = scmp.ge.s32.totalorder %s639_s24, 4   ;;  %s808_s18 = smov %s569_s19 }
 0x205   : > { %s809_s19 = smov %s573_s20  ;;  %s810_s20 = smov %s651_s27 }
 0x206   : > { %s811_s21 = smov %s639_s24  ;;  %20 = sbr.rel (!%p18_p8) target bundleno = 5 (0x5), region = 85 }
 0x20b   :  { %359 = vsyncpa [#allocation3], 1 }
 0x20c   :  { %361 = vsyncpa [#allocation3 + $0x1], 1 }
 0x20d   :  { %362 = vsyncpa [#allocation4], 1 }
 0x20e   :  { %364 = vsyncpa [#allocation4 + $0x1], 1 }

</bundles_post_ra>
